<compile_context>
chip_gen: v6e
topology: v6e:2x2x1
jax: 0.10.0
libtpu: 0.0.40
codegen_flags: <defaults>
</compile_context>

<pallas_src>
import jax
import jax.numpy as jnp
from jax.experimental import pallas as pl
from jax.experimental.pallas import tpu as pltpu


def _identity_copy_kernel(x_ref, o_ref):
    # Pure pass-through: load the current (tm, 128) tile and store it.
    o_ref[...] = x_ref[...]


def pallas_identity(x, *, tile_rows=1024):
    """Identity via a Pallas copy kernel. Works for any shape / dtype."""
    orig_shape, dtype = x.shape, x.dtype

    LANE = 128
    # Sub-32-bit dtypes pack along sublanes; keep row counts a multiple of the
    # packed sublane height so block shapes stay layout-legal.
    itemsize = jnp.dtype(dtype).itemsize
    sub = 8 * max(1, 4 // itemsize)          # f32 -> 8, bf16 -> 16, int8 -> 32
    assert tile_rows % sub == 0

    flat = x.reshape(-1)
    n = flat.shape[0]
    rows_needed = pl.cdiv(max(n, 1), LANE)

    if rows_needed <= tile_rows:
        rows = pl.cdiv(rows_needed, sub) * sub     # single block
        tm = rows
    else:
        rows = pl.cdiv(rows_needed, tile_rows) * tile_rows
        tm = tile_rows

    padded = rows * LANE
    if padded != n:
        flat = jnp.pad(flat, (0, padded - n))
    x2 = flat.reshape(rows, LANE)                  # lane-dense slab

    out = pl.pallas_call(
        _identity_copy_kernel,
        out_shape=jax.ShapeDtypeStruct((rows, LANE), dtype),
        grid_spec=pltpu.PrefetchScalarGridSpec(
            num_scalar_prefetch=0,
            grid=(rows // tm,),
            in_specs=[pl.BlockSpec((tm, LANE), lambda i: (i, 0))],
            out_specs=pl.BlockSpec((tm, LANE), lambda i: (i, 0)),
        ),
        compiler_params=pltpu.CompilerParams(
            dimension_semantics=("parallel",)),
    )(x2)

    return out.reshape(-1)[:n].reshape(orig_shape)


if __name__ == "__main__":
    key = jax.random.PRNGKey(0)
    k1, k2 = jax.random.split(key)

    # Small deterministic input (batch=2, channels=4, spatial=16x16).
    x = jax.random.normal(k1, (2, 4, 16, 16), dtype=jnp.float32)

    fwd = jax.jit(pallas_identity)
    out = jax.block_until_ready(fwd(x))

    assert out.shape == x.shape and out.dtype == x.dtype
    assert bool(jnp.array_equal(out, x)), "identity mismatch"

    # Also exercise a non-(8,128)-aligned shape to check the padding path.
    y = jax.random.normal(k2, (3, 5, 7), dtype=jnp.float32)
    out_y = jax.block_until_ready(jax.jit(pallas_identity)(y))
    assert out_y.shape == y.shape
    assert bool(jnp.array_equal(out_y, y)), "identity mismatch (padded path)"

    print("KERNEL_OK")
</pallas_src>

<mosaic_0001>
module attributes {stable_mosaic.version = 11 : i64} {
  func.func @_identity_copy_kernel(%arg0: i32, %arg1: memref<16x128xf32, #tpu.memory_space<vmem>>, %arg2: memref<16x128xf32, #tpu.memory_space<vmem>>) attributes {dimension_semantics = [#tpu.dimension_semantics<parallel>], iteration_bounds = array<i64: 1>, scalar_prefetch = 0 : i64, scratch_operands = 0 : i64, tpu.core_type = #tpu.core_type<tc>, window_params = [{transform_indices = @transform_0, window_bounds = array<i64: 16, 128>}, {transform_indices = @transform_1, window_bounds = array<i64: 16, 128>}]} {
    %c0 = arith.constant 0 : index
    %c0_0 = arith.constant 0 : index
    %0 = vector.load %arg1[%c0, %c0_0] : memref<16x128xf32, #tpu.memory_space<vmem>>, vector<16x128xf32>
    %c0_1 = arith.constant 0 : index
    %c0_2 = arith.constant 0 : index
    %1 = vector.load %arg2[%c0_1, %c0_2] : memref<16x128xf32, #tpu.memory_space<vmem>>, vector<16x128xf32>
    tpu.vector_store %arg2[%c0_1, %c0_2], %0 {strides = array<i32>} : memref<16x128xf32, #tpu.memory_space<vmem>>, vector<16x128xf32>,
    return
  }
  func.func @transform_0(%arg0: i32) -> (i32, i32) {
    %c0_i32 = arith.constant 0 : i32
    %c0_i32_0 = arith.constant 0 : i32
    return %arg0, %c0_i32 : i32, i32
  }
  func.func @transform_1(%arg0: i32) -> (i32, i32) {
    %c0_i32 = arith.constant 0 : i32
    %c0_i32_0 = arith.constant 0 : i32
    return %arg0, %c0_i32 : i32, i32
  }
}

</mosaic_0001>

<bundles_post_ra>
// kernel: pallas_identity.1
= control target key start
LH: loop header
LB: loop body
LE: loop exit
PB: predicated region body
PF: predicated region fallthrough
CT: control target
= control target key end

     0   :  { %s38_s0 = inlined_call_operand.vmem [shape: f32[16,128], index: 0, kind: input, shape index: {}]   ;;  %s39_s1 = inlined_call_operand.vmem [shape: f32[16,128], index: 1, kind: output, shape index: {}]  }
   0x1   :  { %v8_v0 = vld [vmem:[%s38_s0] sm:$0xff]  ;;  %v9_v1 = vld [vmem:[%s38_s0 + $0x8] sm:$0xff] }
   0x2   :  { %10 = vst [vmem:[%s39_s1] sm:$0xff] %v8_v0  ;;  %11 = vst [vmem:[%s39_s1 + $0x8] sm:$0xff] %v9_v1 }

</bundles_post_ra>
